<compile_context>
chip_gen: v6e
topology: v6e:2x2x1
jax: 0.10.0
libtpu: 0.0.40
codegen_flags: <defaults>
</compile_context>

<pallas_src>
import functools

import jax
import jax.numpy as jnp
from jax import lax
from jax.experimental import pallas as pl
from jax.experimental.pallas import tpu as pltpu

_HIGHEST = lax.Precision.HIGHEST


def _pia_kernel(x_ref, wa_ref, w_ref, b_ref, o_ref, *, lane_pack):
    x = x_ref[...].astype(jnp.float32)                          # (TB, S, D)

    # Attention logits: VPU broadcast-multiply + lane reduction (no degenerate
    # (D, 1) MXU matmul).  The W_a bias is dropped: softmax is shift invariant.
    logits = jnp.sum(x * wa_ref[...], axis=-1, keepdims=True)   # (TB, S, 1)

    # Numerically stable softmax over S; exact division for parity with torch.
    m = jnp.max(logits, axis=1, keepdims=True)                  # (TB, 1, 1)
    e = jnp.exp(logits - m)                                     # (TB, S, 1)
    p = e / jnp.sum(e, axis=1, keepdims=True)                   # (TB, S, 1)

    # Pool raw x first (exact: softmax weights sum to 1 and W_v is affine),
    # then one fused projection  W = W_v @ W_o,  b = b_v @ W_o + b_o  (wrapper).
    # TODO(synk): for D < 128 the logits/softmax/pool path only occupies D/128
    # of each vreg lane; packing 128//D batch rows into the lane axis needs an
    # interleaving relayout of x (not a pure reshape), so it is left out until
    # profiling shows the VPU/XLU slot binding over HBM bandwidth.
    pooled = jnp.sum(p * x, axis=1)                             # (TB, D)
    out = jnp.dot(pooled, w_ref[...],
                  preferred_element_type=jnp.float32,
                  precision=_HIGHEST) + b_ref[...]              # (TB, D)

    if lane_pack > 1:
        # Lane-dense store: view lane_pack consecutive rows as one 128-lane row
        # (row-major, so the wrapper-side unpack is a pure metadata reshape).
        tb, d = out.shape
        out = out.reshape(tb // lane_pack, lane_pack * d)
    o_ref[...] = out.astype(o_ref.dtype)


def _round_up(v, m):
    return -(-v // m) * m


def _vmem_budget_bytes():
    """Per-generation scoped-VMEM budget with headroom.

    v7x has only 64 MiB physical VMEM per TensorCore; v5e/v6e have 128 MiB.
    """
    try:
        phys = int(pltpu.get_tpu_info().vmem_capacity_bytes)
    except Exception:
        phys = 64 * 1024 * 1024          # assume the smallest (v7x) if unknown
    return max(16 * 1024 * 1024, min(phys // 2, 64 * 1024 * 1024))


def _vmem_need_bytes(tb, S, D, x_itemsize):
    """Honest VMEM accounting for one pipelined grid step (perf feedback)."""
    s_pad = _round_up(max(S, 1), 8)
    d_pad = _round_up(max(D, 1), 128)
    # Resident operands: their index maps are constant so they are never
    # re-DMA'd, but BlockSpec still double-buffers them -> count both buffers.
    weights = 2 * d_pad * d_pad * 4 + 6 * d_pad * 4
    per_row = (
        s_pad * d_pad * 2 * x_itemsize   # x tile, double buffered
        + s_pad * d_pad * 4 * 4          # in-kernel f32 temporaries (x, e, p, p*x)
        + 2 * 128 * 4                    # output tile, double buffered
    )
    return weights + tb * per_row


def _choose_block_rows(B, S, D, x_itemsize, lane_pack, budget):
    """Pick rows per grid step from the VMEM budget and megacore constraints."""
    align = 8 * max(lane_pack, 1)
    if B <= align:
        return B
    s_pad = _round_up(S, 8)
    d_pad = _round_up(D, 128)
    weights = 2 * d_pad * d_pad * 4 + 6 * d_pad * 4
    per_row = s_pad * d_pad * (2 * x_itemsize + 16) + 2 * 128 * 4
    rows = max(align, (budget - weights) // per_row)
    # Cap at ~B/2 so there are >= 2 grid steps and the "parallel" axis can
    # shard across both TensorCores of a v7x megacore (one extra grid step is
    # ~0.35us of overhead on single-core v5e/v6e, i.e. noise).
    half = _round_up(-(-B // 2), align)
    rows = min(rows, half)
    rows = max(align, (rows // align) * align)
    return int(min(rows, B))


def pia_encoder(x, params, is_agent=True, block_rows=None, lane_dense_store=None):
    """Pallas implementation of PIAEncoder.forward.

    params = (wa, ba, wv, bv, wo, bo) with weights stored (in, out).
    Note: x may be bf16 in HBM; it is upcast to f32 inside the kernel.
    """
    orig_shape = x.shape
    if not is_agent:
        mb, bs, n_agents, d = x.shape
        x = x.reshape(mb * bs, n_agents, d)
    B, S, D = x.shape
    wa, ba, wv, bv, wo, bo = params
    del ba  # softmax shift invariance: the W_a bias can never change the output.

    # Fold W_v and W_o (exact in exact arithmetic).  precision=HIGHEST keeps the
    # fold f32-accurate (TPU default matmul precision is bf16-ish).
    w_fused = jnp.dot(wv, wo, precision=_HIGHEST).astype(jnp.float32)          # (D, D)
    b_fused = (jnp.dot(bv, wo, precision=_HIGHEST) + bo).astype(jnp.float32)   # (1, D)
    wa_row = wa.reshape(1, 1, D).astype(jnp.float32)                           # (1, 1, D)

    # Lane-packing factor for the output store (D < 128 -> k rows per 128 lanes).
    k = 128 // D if (D < 128 and 128 % D == 0) else 1

    budget = _vmem_budget_bytes()
    x_itemsize = jnp.dtype(x.dtype).itemsize
    if block_rows is None:
        TB = _choose_block_rows(B, S, D, x_itemsize, k, budget)
    elif block_rows >= B:
        TB = B
    else:
        TB = min(B, _round_up(max(block_rows, 1), 8))

    lane_pack = 1
    if k > 1 and B % k == 0 and TB % k == 0 and (TB == B or (TB // k) % 8 == 0):
        lane_pack = k
    if lane_dense_store is False:
        lane_pack = 1

    grid = (pl.cdiv(B, TB),)

    if lane_pack > 1:
        out_shape = jax.ShapeDtypeStruct((B // lane_pack, lane_pack * D), x.dtype)
        out_spec = pl.BlockSpec((TB // lane_pack, lane_pack * D), lambda b: (b, 0))
    else:
        out_shape = jax.ShapeDtypeStruct((B, D), x.dtype)
        out_spec = pl.BlockSpec((TB, D), lambda b: (b, 0))

    vmem_limit = int(max(_vmem_need_bytes(TB, S, D, x_itemsize) * 5 // 4, budget))

    out = pl.pallas_call(
        functools.partial(_pia_kernel, lane_pack=lane_pack),
        out_shape=out_shape,
        grid=grid,
        in_specs=[
            pl.BlockSpec((TB, S, D), lambda b: (b, 0, 0)),   # x (streamed)
            pl.BlockSpec((1, 1, D), lambda b: (0, 0, 0)),    # W_a row (resident)
            pl.BlockSpec((D, D), lambda b: (0, 0)),          # fused W_v @ W_o (resident)
            pl.BlockSpec((1, D), lambda b: (0, 0)),          # fused bias (resident)
        ],
        out_specs=out_spec,
        compiler_params=pltpu.CompilerParams(
            dimension_semantics=("parallel",),
            vmem_limit_bytes=vmem_limit,
        ),
    )(x, wa_row, w_fused, b_fused)

    out = out.reshape(B, D)   # undo lane packing: pure row-major metadata reshape
    if not is_agent:
        out = out.reshape(orig_shape[0], orig_shape[1], D)
    return out


def pia_encoder_ref(x, params, is_agent=True):
    """Pure-JAX reference matching the PyTorch forward (f32-accurate matmuls)."""
    orig_shape = x.shape
    if not is_agent:
        mb, bs, n_agents, d = x.shape
        x = x.reshape(mb * bs, n_agents, d)
    wa, ba, wv, bv, wo, bo = params
    mm = functools.partial(jnp.matmul, precision=_HIGHEST)
    attn = (mm(x, wa) + ba[0]).swapaxes(-1, -2)          # (B, 1, S)
    attn = jax.nn.softmax(attn, axis=-1)
    v = mm(x, wv) + bv                                   # (B, S, D)
    pooled = jnp.squeeze(mm(attn, v), axis=1)            # (B, D)
    out = mm(pooled, wo) + bo                            # (B, D)
    if not is_agent:
        out = out.reshape(orig_shape[0], orig_shape[1], -1)
    return out


def init_params(key, context_dim):
    # Deterministic synthetic init (stand-in for ptu.m_init); shapes match the
    # torch module: W_a: (D->1), W_v: (D->D), W_o: (D->D), each with bias.
    ks = jax.random.split(key, 6)
    scale = 1.0 / jnp.sqrt(context_dim)
    wa = jax.random.normal(ks[0], (context_dim, 1), jnp.float32) * scale
    ba = jax.random.normal(ks[1], (1, 1), jnp.float32) * 0.01
    wv = jax.random.normal(ks[2], (context_dim, context_dim), jnp.float32) * scale
    bv = jax.random.normal(ks[3], (1, context_dim), jnp.float32) * 0.01
    wo = jax.random.normal(ks[4], (context_dim, context_dim), jnp.float32) * scale
    bo = jax.random.normal(ks[5], (1, context_dim), jnp.float32) * 0.01
    return (wa, ba, wv, bv, wo, bo)


if __name__ == "__main__":
    key = jax.random.PRNGKey(0)
    k_param, k_x1, k_x2, k_x3 = jax.random.split(key, 4)

    context_dim = 32
    params = init_params(k_param, context_dim)

    TOL = dict(atol=2e-3, rtol=2e-3)

    # 1) is_agent=True path: x is (meta_batch, batch_size, context_dim).
    #    B=2 rows -> single grid step, un-packed store (B not divisible by 128//D).
    x_agent = jax.random.normal(k_x1, (2, 8, context_dim), jnp.float32)
    out_agent = jax.block_until_ready(pia_encoder(x_agent, params, is_agent=True))
    ref_agent = pia_encoder_ref(x_agent, params, is_agent=True)
    assert out_agent.shape == (2, context_dim)
    assert jnp.allclose(out_agent, ref_agent, **TOL), (
        float(jnp.max(jnp.abs(out_agent - ref_agent))))

    # 2) is_agent=False path: x is (meta_batch, batch_size, n_agents, context_dim).
    #    8 pooled rows -> lane-dense (2, 128) output slab.
    x_multi = jax.random.normal(k_x2, (2, 4, 8, context_dim), jnp.float32)
    out_multi = jax.block_until_ready(pia_encoder(x_multi, params, is_agent=False))
    ref_multi = pia_encoder_ref(x_multi, params, is_agent=False)
    assert out_multi.shape == (2, 4, context_dim)
    assert jnp.allclose(out_multi, ref_multi, **TOL), (
        float(jnp.max(jnp.abs(out_multi - ref_multi))))

    # 3) Auto tile choice: 64 rows -> TB=32, grid=(2,) so both v7x TensorCores
    #    get a shard; lane-dense packed output blocks of (8, 128).
    x_big = jax.random.normal(k_x3, (64, 8, context_dim), jnp.float32)
    out_big = jax.block_until_ready(pia_encoder(x_big, params, is_agent=True))
    ref_big = pia_encoder_ref(x_big, params, is_agent=True)
    assert out_big.shape == (64, context_dim)
    assert jnp.allclose(out_big, ref_big, **TOL), (
        float(jnp.max(jnp.abs(out_big - ref_big))))

    # 4) Explicit small blocks: multi-step grid on the un-packed store path.
    out_sm = jax.block_until_ready(
        pia_encoder(x_big, params, is_agent=True, block_rows=8))
    assert jnp.allclose(out_sm, ref_big, **TOL), (
        float(jnp.max(jnp.abs(out_sm - ref_big))))

    print("KERNEL_OK")
</pallas_src>

<mosaic_0001>
module attributes {stable_mosaic.version = 11 : i64} {
  func.func @_pia_kernel(%arg0: i32, %arg1: memref<2x8x32xf32, #tpu.memory_space<vmem>>, %arg2: memref<1x1x32xf32, #tpu.memory_space<vmem>>, %arg3: memref<32x32xf32, #tpu.memory_space<vmem>>, %arg4: memref<1x32xf32, #tpu.memory_space<vmem>>, %arg5: memref<2x32xf32, #tpu.memory_space<vmem>>) attributes {dimension_semantics = [#tpu.dimension_semantics<parallel>], iteration_bounds = array<i64: 1>, scalar_prefetch = 0 : i64, scratch_operands = 0 : i64, tpu.core_type = #tpu.core_type<tc>, window_params = [{transform_indices = @transform_0, window_bounds = array<i64: 2, 8, 32>}, {pipeline_mode = #tpu.pipeline_mode<synchronous>, transform_indices = @transform_1, window_bounds = array<i64: 1, 1, 32>}, {pipeline_mode = #tpu.pipeline_mode<synchronous>, transform_indices = @transform_2, window_bounds = array<i64: 32, 32>}, {pipeline_mode = #tpu.pipeline_mode<synchronous>, transform_indices = @transform_3, window_bounds = array<i64: 1, 32>}, {transform_indices = @transform_4, window_bounds = array<i64: 2, 32>}]} {
    %c0 = arith.constant 0 : index
    %c0_0 = arith.constant 0 : index
    %c0_1 = arith.constant 0 : index
    %0 = vector.load %arg1[%c0, %c0_0, %c0_1] : memref<2x8x32xf32, #tpu.memory_space<vmem>>, vector<2x8x32xf32>
    %c0_2 = arith.constant 0 : index
    %c0_3 = arith.constant 0 : index
    %c0_4 = arith.constant 0 : index
    %1 = vector.load %arg2[%c0_2, %c0_3, %c0_4] : memref<1x1x32xf32, #tpu.memory_space<vmem>>, vector<1x1x32xf32>
    %2 = vector.broadcast %1 : vector<1x1x32xf32> to vector<2x8x32xf32>
    %3 = arith.mulf %0, %2 : vector<2x8x32xf32>
    %cst = arith.constant dense<0.000000e+00> : vector<2x8xf32>
    %4 = vector.multi_reduction <add>, %3, %cst [2] : vector<2x8x32xf32> to vector<2x8xf32>
    %5 = vector.shape_cast %4 : vector<2x8xf32> to vector<2x8x1xf32>
    %cst_5 = arith.constant dense<0xFF800000> : vector<2x1xf32>
    %6 = vector.multi_reduction <maximumf>, %5, %cst_5 [1] : vector<2x8x1xf32> to vector<2x1xf32>
    %7 = vector.shape_cast %6 : vector<2x1xf32> to vector<2x1x1xf32>
    %8 = vector.broadcast %7 : vector<2x1x1xf32> to vector<2x8x1xf32>
    %9 = arith.subf %5, %8 : vector<2x8x1xf32>
    %10 = math.exp %9 : vector<2x8x1xf32>
    %cst_6 = arith.constant dense<0.000000e+00> : vector<2x1xf32>
    %11 = vector.multi_reduction <add>, %10, %cst_6 [1] : vector<2x8x1xf32> to vector<2x1xf32>
    %12 = vector.shape_cast %11 : vector<2x1xf32> to vector<2x1x1xf32>
    %13 = vector.broadcast %12 : vector<2x1x1xf32> to vector<2x8x1xf32>
    %14 = arith.divf %10, %13 : vector<2x8x1xf32>
    %15 = vector.broadcast %14 : vector<2x8x1xf32> to vector<2x8x32xf32>
    %16 = arith.mulf %15, %0 : vector<2x8x32xf32>
    %cst_7 = arith.constant dense<0.000000e+00> : vector<2x32xf32>
    %17 = vector.multi_reduction <add>, %16, %cst_7 [1] : vector<2x8x32xf32> to vector<2x32xf32>
    %c0_8 = arith.constant 0 : index
    %c0_9 = arith.constant 0 : index
    %18 = vector.load %arg3[%c0_8, %c0_9] : memref<32x32xf32, #tpu.memory_space<vmem>>, vector<32x32xf32>
    %cst_10 = arith.constant dense<0.000000e+00> : vector<2x32xf32>
    %19 = tpu.matmul %17, %18, %cst_10 {dimension_numbers = #tpu.dot_dimension_numbers<[1], [0], [0], [1], [0, 0, 1, 1], [], []>, precision = #tpu.contract_precision<fp32>} : vector<2x32xf32>, vector<32x32xf32>, vector<2x32xf32> -> vector<2x32xf32>
    %c0_11 = arith.constant 0 : index
    %c0_12 = arith.constant 0 : index
    %20 = vector.load %arg4[%c0_11, %c0_12] : memref<1x32xf32, #tpu.memory_space<vmem>>, vector<1x32xf32>
    %21 = vector.broadcast %20 : vector<1x32xf32> to vector<2x32xf32>
    %22 = arith.addf %19, %21 : vector<2x32xf32>
    %c0_13 = arith.constant 0 : index
    %c0_14 = arith.constant 0 : index
    %23 = vector.load %arg5[%c0_13, %c0_14] : memref<2x32xf32, #tpu.memory_space<vmem>>, vector<2x32xf32>
    tpu.vector_store %arg5[%c0_13, %c0_14], %22 {strides = array<i32>} : memref<2x32xf32, #tpu.memory_space<vmem>>, vector<2x32xf32>,
    return
  }
  func.func @transform_0(%arg0: i32) -> (i32, i32, i32) {
    %c0_i32 = arith.constant 0 : i32
    %c0_i32_0 = arith.constant 0 : i32
    %c0_i32_1 = arith.constant 0 : i32
    return %arg0, %c0_i32, %c0_i32_0 : i32, i32, i32
  }
  func.func @transform_1(%arg0: i32) -> (i32, i32, i32) {
    %c0_i32 = arith.constant 0 : i32
    %c0_i32_0 = arith.constant 0 : i32
    %c0_i32_1 = arith.constant 0 : i32
    %c0_i32_2 = arith.constant 0 : i32
    return %c0_i32, %c0_i32_0, %c0_i32_1 : i32, i32, i32
  }
  func.func @transform_2(%arg0: i32) -> (i32, i32) {
    %c0_i32 = arith.constant 0 : i32
    %c0_i32_0 = arith.constant 0 : i32
    %c0_i32_1 = arith.constant 0 : i32
    return %c0_i32, %c0_i32_0 : i32, i32
  }
  func.func @transform_3(%arg0: i32) -> (i32, i32) {
    %c0_i32 = arith.constant 0 : i32
    %c0_i32_0 = arith.constant 0 : i32
    %c0_i32_1 = arith.constant 0 : i32
    return %c0_i32, %c0_i32_0 : i32, i32
  }
  func.func @transform_4(%arg0: i32) -> (i32, i32) {
    %c0_i32 = arith.constant 0 : i32
    %c0_i32_0 = arith.constant 0 : i32
    return %arg0, %c0_i32 : i32, i32
  }
}

</mosaic_0001>

<bundles_post_ra>
// kernel: tpu_custom_call.1
= control target key start
LH: loop header
LB: loop body
LE: loop exit
PB: predicated region body
PF: predicated region fallthrough
CT: control target
= control target key end

     0   :  { %9 = vsyncpa [#allocation3], 0  ;;  %s969_s0 = inlined_call_operand.hbm [shape: f32[2,8,32], index: 0, kind: input, shape index: {}]   ;;  %s970_s1 = inlined_call_operand.vmem [shape: f32[1,1,32], index: 1, kind: input, shape index: {}]   ;;  %s971_s2 = inlined_call_operand.hbm [shape: f32[32,32], index: 2, kind: input, shape index: {}]   ;;  %s972_s3 = inlined_call_operand.vmem [shape: f32[1,32], index: 3, kind: input, shape index: {}]   ;;  %s973_s4 = inlined_call_operand.hbm [shape: f32[2,32], index: 4, kind: output, shape index: {}]  }
   0x1   :  { %10 = vsyncpa [#allocation6], 0 }
   0x2   :  { %11 = vsyncpa [#allocation4], 0  ;;  %s813_s15 = smov [#allocation2]  }
   0x3   :  { %s17_s16 = sshll.u32 %s813_s15, 4  ;;  %s18_s16 = int_to_ptr.vmem [resolvable:$true] %s17_s16 }
   0x4   :  { %s755_s17 = scalar_lea.vmem %s18_s16, 256  ;;  %p760_p1 = scmp.lt.s32.totalorder %s18_s16, %s18_s16 }
   0x5   :  { %p756_p0 = scmp.ne.s32.totalorder %s18_s16, %s755_s17  ;;  %p761_p2 = scmp.lt.s32.totalorder %s755_s17, %s755_s17 }
   0x7   :  { %p762_p3 = por %p761_p2, %p760_p1 }
   0x9   :  { %p763_p4 = pnand %p762_p3, %p756_p0 }
   0xb   :  { %766 = shalt.err (!%p763_p4)
}
   0xc   :  { %s814_s18 = smov 128   ;;  %s815_s19 = smov 8  }
   0xd   :  { %23 = dma.hbm_to_vmem [thread:$0]  %s969_s0, 256, %s18_s16, [#allocation3], %s814_s18, %s814_s18, %s815_s19  }
   0xe   :  { %s816_s22 = smov [#allocation5]  }
   0xf   :  { %s31_s23 = sshll.u32 %s816_s22, 4  ;;  %s32_s23 = int_to_ptr.vmem [resolvable:$true] %s31_s23 }
  0x10   :  { %s775_s24 = scalar_lea.vmem %s32_s23, 512  ;;  %p780_p6 = scmp.lt.s32.totalorder %s32_s23, %s32_s23 }
  0x11   :  { %p776_p5 = scmp.ne.s32.totalorder %s32_s23, %s775_s24  ;;  %p781_p7 = scmp.lt.s32.totalorder %s775_s24, %s775_s24 }
  0x13   :  { %p782_p8 = por %p781_p7, %p780_p6 }
  0x15   :  { %p783_p9 = pnand %p782_p8, %p776_p5 }
  0x17   :  { %786 = shalt.err (!%p783_p9)
}
  0x18   :  { %37 = dma.hbm_to_vmem [thread:$0]  %s971_s2, 512, %s32_s23, [#allocation6], %s814_s18, %s814_s18, %s815_s19  }
  0x19   :  { %807 = dma.done.wait [#allocation3], 256  }
  0x1a   :  { %808 = vsyncadd [#allocation3], 4294967040 }
  0x1b   :  { %809 = dma.done.wait [#allocation6], 512  }
  0x1c   :  { %810 = vsyncadd [#allocation6], 4294966784  ;;  %v851_v0 = vld [vmem:[#allocation2] sm:$0xff]  ;;  %vm57_vm0 = vcmask 261120   ;;  %v856_v2 = vld [vmem:[#allocation2 + $0x8] sm:$0xff]  ;;  %v817_v10 = vmov 0.0  }
  0x1d   :  { %v634_v1 = vld [vmem:[%s970_s1] ss:$0 sm:$0xff]  ;;  %v117_v7 = vld [vmem:[#allocation5 + $0x18] sm:$0xff]  ;;  %v115_v9 = vld [vmem:[#allocation5 + $0x8] sm:$0xff]  ;;  %677 = vmatprep.subr.mxu1 %v817_v10  ;;  %666 = vmatprep.subr.mxu0 %v817_v10  ;;  %vm818_vm1 = vmmov 0   ;;  %vm127_vm2 = vcmask 1041409  }
  0x1e   :  { %v55_v3 = vmul.f32 %v634_v1, %v851_v0  ;;  %v56_v4 = vmul.f32 %v634_v1, %v856_v2  ;;  %v116_v8 = vld [vmem:[#allocation5 + $0x10] sm:$0xff]  ;;  %v863_v11 = vand.u32 4294901760, %v117_v7  ;;  %v867_v13 = vand.u32 4294901760, %v115_v9  ;;  %v114_v14 = vld [vmem:[#allocation5] sm:$0xff]  ;;  %685 = vmatprep.mubr.msk.f32.mxu1 %vm818_vm1, %v817_v10  ;;  %674 = vmatprep.mubr.msk.f32.mxu0 %vm818_vm1, %v817_v10  ;;  %s819_s28 = smov [#allocation7]  }
  0x1f   :  { %v865_v12 = vand.u32 4294901760, %v116_v8  ;;  %v870_v15 = vand.u32 4294901760, %v114_v14  ;;  %s624_s29 = sshll.u32 %s819_s28, 4  ;;  %vm616_vm3 = vcmask 254976   ;;  %s625_s29 = int_to_ptr.vmem [resolvable:$true] %s624_s29 }
  0x20   :  { %v58_v5 = vsel %vm57_vm0, %v55_v3, 0.0  ;;  %v61_v6 = vsel %vm57_vm0, %v56_v4, 0.0  ;;  %v877_v16 = vsub.f32 %v117_v7, %v863_v11  ;;  %v883_v18 = vsub.f32 %v115_v9, %v867_v13  ;;  %667 = vmatpush3.msra.mxu0 %v863_v11  ;;  %s787_s30 = scalar_lea.vmem %s625_s29, 32  ;;  %p792_p11 = scmp.lt.s32.totalorder %s625_s29, %s625_s29 }
  0x21   :  { %59 = vadd.xlane.f32.xlu0 %v58_v5  ;;  %v880_v17 = vsub.f32 %v116_v8, %v865_v12  ;;  %v887_v19 = vsub.f32 %v114_v14, %v870_v15  ;;  %668 = vmatprep.subr.mxu0 %v817_v10  ;;  %p788_p10 = scmp.ne.s32.totalorder %s625_s29, %s787_s30  ;;  %p793_p12 = scmp.lt.s32.totalorder %s787_s30, %s787_s30 }
  0x22   :  { %v237_v20 = vand.u32 4294901760, %v877_v16  ;;  %v251_v22 = vand.u32 4294901760, %v883_v18  ;;  %669 = vmatpush3.msra.mxu0 %v865_v12 }
  0x23   :  { %v244_v21 = vand.u32 4294901760, %v880_v17  ;;  %v258_v23 = vand.u32 4294901760, %v887_v19  ;;  %670 = vmatprep.subr.mxu0 %v817_v10  ;;  %p794_p13 = por %p793_p12, %p792_p11 }
  0x24   :  { %v238_v24 = vsub.f32 %v877_v16, %v237_v20  ;;  %v252_v26 = vsub.f32 %v883_v18, %v251_v22  ;;  %671 = vmatpush3.msra.mxu0 %v867_v13 }
  0x25   :  { %62 = vadd.xlane.f32.xlu0 %v61_v6  ;;  %v245_v25 = vsub.f32 %v880_v17, %v244_v21  ;;  %672 = vmatprep.subr.mxu0 %v817_v10  ;;  %v259_v29 = vsub.f32 %v887_v19, %v258_v23  ;;  %p795_p0 = pnand %p794_p13, %p788_p10 }
  0x26   :  { %v239_v27 = vand.u32 4294901760, %v238_v24  ;;  %673 = vmatpush3.msra.mxu0 %v870_v15  ;;  %v253_v30 = vand.u32 4294901760, %v252_v26 }
  0x27   :  { %v246_v28 = vand.u32 4294901760, %v245_v25  ;;  %688 = vmatprep.subr.mxu0 %v817_v10  ;;  %v260_v31 = vand.u32 4294901760, %v259_v29 }
  0x28   :  { %678 = vmatpush3.msra.mxu1 %v239_v27 }
  0x29   :  { %679 = vmatprep.subr.mxu1 %v817_v10 }
  0x2a   :  { %680 = vmatpush3.msra.mxu1 %v246_v28 }
  0x2b   :  { %681 = vmatprep.subr.mxu1 %v817_v10 }
  0x2c   :  { %682 = vmatpush3.msra.mxu1 %v253_v30 }
  0x2d   :  { %683 = vmatprep.subr.mxu1 %v817_v10 }
  0x2e   :  { %684 = vmatpush3.msra.mxu1 %v260_v31 }
  0x2f   :  { %699 = vmatprep.subr.mxu1 %v817_v10 }
  0xaa   :  { %v60_v32 = vpop.xlane.xlu0 %59 }
  0xab   :  { %v64_v33 = vrot.slane %v60_v32, 4 }
  0xad   :  { %v65_v34 = vmax.f32 %v60_v32, %v64_v33 }
  0xae   :  { %v63_v35 = vpop.xlane.xlu0 %62 }
  0xaf   :  { %v66_v36 = vrot.slane %v65_v34, 2  ;;  %v70_v37 = vrot.slane %v63_v35, 4 }
  0xb1   :  { %v67_v38 = vmax.f32 %v65_v34, %v66_v36  ;;  %v71_v39 = vmax.f32 %v63_v35, %v70_v37 }
  0xb3   :  { %v68_v40 = vrot.slane %v67_v38, 1  ;;  %v72_v41 = vrot.slane %v71_v39, 2 }
  0xb5   :  { %v69_v42 = vmax.f32 %v67_v38, %v68_v40  ;;  %v73_v43 = vmax.f32 %v71_v39, %v72_v41 }
  0xb7   :  { %v76_v44 = vsub.f32 %v60_v32, %v69_v42  ;;  %v74_v45 = vrot.slane %v73_v43, 1 }
  0xb9   :  { %v78_v46 = vmul.f32 1.442695, %v76_v44  ;;  %v75_v47 = vmax.f32 %v73_v43, %v74_v45 }
  0xbb   :  { %739 = vpow2.f32 %v78_v46  ;;  %v77_v48 = vsub.f32 %v63_v35, %v75_v47 }
  0xbd   :  { %v80_v49 = vmul.f32 1.442695, %v77_v48 }
  0xbf   :  { %741 = vpow2.f32 %v80_v49 }
  0xc8   :  { %v740_v50 = vpop.eup %739 }
  0xc9   :  { %v82_v51 = vrot.slane %v740_v50, 4 }
  0xcb   :  { %v83_v52 = vadd.f32 %v740_v50, %v82_v51 }
  0xcc   :  { %v742_v53 = vpop.eup %741 }
  0xcd   :  { %v84_v54 = vrot.slane %v83_v52, 2  ;;  %v88_v55 = vrot.slane %v742_v53, 4 }
  0xcf   :  { %v85_v56 = vadd.f32 %v84_v54, %v83_v52  ;;  %v89_v57 = vadd.f32 %v742_v53, %v88_v55 }
  0xd1   :  { %v90_v58 = vrot.slane %v89_v57, 2  ;;  %v86_v59 = vrot.slane %v85_v56, 1 }
  0xd3   :  { %v91_v60 = vadd.f32 %v90_v58, %v89_v57  ;;  %v87_v61 = vadd.f32 %v86_v59, %v85_v56 }
  0xd5   :  { %v92_v62 = vrot.slane %v91_v60, 1  ;;  %743 = vrcp.f32 %v87_v61 }
  0xd7   :  { %v93_v63 = vadd.f32 %v92_v62, %v91_v60 }
  0xd9   :  { %745 = vrcp.f32 %v93_v63 }
  0xe2   :  { %v744_v1 = vpop.eup %743 }
  0xe3   :  { %v95_v3 = vmul.f32 %v744_v1, %v740_v50 }
  0xe5   :  { %v98_v4 = vmul.f32 %v95_v3, %v851_v0 }
  0xe6   :  { %v746_v5 = vpop.eup %745 }
  0xe7   :  { %v97_v6 = vmul.f32 %v746_v5, %v742_v53  ;;  %v100_v7 = vsel %vm57_vm0, %v98_v4, 0.0 }
  0xe8   :  { %v101_v8 = vrot.slane %v100_v7, 4 }
  0xe9   :  { %v99_v9 = vmul.f32 %v97_v6, %v856_v2 }
  0xea   :  { %v102_v14 = vadd.f32 %v101_v8, %v100_v7 }
  0xeb   :  { %v107_v24 = vsel %vm57_vm0, %v99_v9, 0.0 }
  0xec   :  { %v103_v25 = vrot.slane %v102_v14, 2  ;;  %v108_v26 = vrot.slane %v107_v24, 4 }
  0xee   :  { %v104_v27 = vadd.f32 %v103_v25, %v102_v14  ;;  %v109_v28 = vadd.f32 %v108_v26, %v107_v24 }
  0xf0   :  { %v110_v29 = vrot.slane %v109_v28, 2  ;;  %v105_v30 = vrot.slane %v104_v27, 1 }
  0xf2   :  { %v111_v31 = vadd.f32 %v110_v29, %v109_v28  ;;  %v106_v0 = vadd.f32 %v105_v30, %v104_v27 }
  0xf4   :  { %v112_v32 = vrot.slane %v111_v31, 1 }
  0xf6   :  { %v113_v33 = vadd.f32 %v112_v32, %v111_v31 }
  0xf8   :  { %v128_v34 = vsel %vm127_vm2, %v113_v33, %v106_v0 }
  0xf9   :  { %v129_v35 = vsel %vm57_vm0, %v128_v34, 0 }
  0xfa   :  { %v200_v36 = vand.u32 4294901760, %v129_v35 }
  0xfc   :  { %v201_v37 = vsub.f32 %v129_v35, %v200_v36  ;;  %686 = vmatmul.mubr.f32.vlgmr.msra.gmra.mxu1 %v200_v36 }
  0xfd   :  { %700 = vmatpush3.msra.mxu1 %v863_v11  ;;  %707 = vmatprep.mubr.msk.f32.mxu1 %vm818_vm1, %v817_v10 }
  0xfe   :  { %701 = vmatprep.subr.mxu1 %v817_v10  ;;  %v202_v2 = vand.u32 4294901760, %v201_v37 }
  0xff   :  { %702 = vmatpush3.msra.mxu1 %v865_v12 }
 0x100   :  { %703 = vmatprep.subr.mxu1 %v817_v10  ;;  %v203_v38 = vsub.f32 %v201_v37, %v202_v2 }
 0x101   :  { %704 = vmatpush3.msra.mxu1 %v867_v13 }
 0x102   :  { %705 = vmatprep.subr.mxu1 %v817_v10  ;;  %v204_v39 = vand.u32 4294901760, %v203_v38 }
 0x103   :  { %706 = vmatpush3.msra.mxu1 %v870_v15 }
 0x104   :  { %708 = vmatmul.mubr.f32.vlgmr.msra.gmra.mxu1 %v202_v2  ;;  %721 = vmatprep.subr.mxu1 %v817_v10 }
 0x105   :  { %675 = vmatmul.mubr.f32.vlgmr.msra.gmra.mxu0 %v204_v39  ;;  %722 = vmatpush3.msra.mxu1 %v863_v11 }
 0x106   :  { %689 = vmatpush3.msra.mxu0 %v877_v16  ;;  %723 = vmatprep.subr.mxu1 %v817_v10 }
 0x107   :  { %690 = vmatprep.subr.mxu0 %v817_v10  ;;  %724 = vmatpush3.msra.mxu1 %v865_v12 }
 0x108   :  { %691 = vmatpush3.msra.mxu0 %v880_v17  ;;  %725 = vmatprep.subr.mxu1 %v817_v10  ;;  %v635_v17 = vld [vmem:[%s972_s3] ss:$0 sm:$0xff] }
 0x109   :  { %692 = vmatprep.subr.mxu0 %v817_v10  ;;  %726 = vmatpush3.msra.mxu1 %v867_v13 }
 0x10a   :  { %693 = vmatpush3.msra.mxu0 %v883_v18  ;;  %727 = vmatprep.subr.mxu1 %v817_v10 }
 0x10b   :  { %694 = vmatprep.subr.mxu0 %v817_v10  ;;  %696 = vmatprep.mubr.msk.f32.mxu0 %vm818_vm1, %v817_v10 }
 0x10c   :  { %695 = vmatpush3.msra.mxu0 %v887_v19  ;;  %728 = vmatpush3.msra.mxu1 %v870_v15 }
 0x10d   :  { %729 = vmatprep.mubr.msk.f32.mxu1 %vm818_vm1, %v817_v10  ;;  %697 = vmatmul.mubr.f32.vlgmr.msra.gmra.mxu0 %v201_v37 }
 0x10e   :  { %710 = vmatprep.subr.mxu0 %v817_v10  ;;  %730 = vmatmul.mubr.f32.vlgmr.msra.gmra.mxu1 %v200_v36 }
 0x10f   :  { %711 = vmatpush3.msra.mxu0 %v237_v20  ;;  %718 = vmatprep.mubr.msk.f32.mxu0 %vm818_vm1, %v817_v10 }
 0x110   :  { %712 = vmatprep.subr.mxu0 %v817_v10 }
 0x111   :  { %713 = vmatpush3.msra.mxu0 %v244_v21 }
 0x112   :  { %714 = vmatprep.subr.mxu0 %v817_v10 }
 0x113   :  { %715 = vmatpush3.msra.mxu0 %v251_v22 }
 0x114   :  { %716 = vmatprep.subr.mxu0 %v817_v10 }
 0x115   :  { %717 = vmatpush3.msra.mxu0 %v258_v23 }
 0x116   :  { %719 = vmatmul.mubr.f32.vlgmr.msra.gmra.mxu0 %v200_v36 }
 0x1bc   :  { %v297_v11 = vpop.f32.mrf.mxu1 }
 0x1be   :  { %v687_v12 = vpop.f32.mrf.mxu1 }
 0x1c4   :  { %v454_v13 = vpop.f32.mrf.mxu1 }
 0x1c5   :  { %v206_v15 = vpop.f32.mrf.mxu0 }
 0x1c6   :  { %v709_v16 = vpop.f32.mrf.mxu1  ;;  %v207_v21 = vadd.f32 %v635_v17, %v206_v15 }
 0x1c7   :  { %v676_v20 = vpop.f32.mrf.mxu0 }
 0x1c8   :  { %v298_v22 = vadd.f32 %v297_v11, %v207_v21 }
 0x1cd   :  { %v377_v40 = vpop.f32.mrf.mxu0 }
 0x1ce   :  { %v612_v18 = vpop.f32.mrf.mxu1  ;;  %v378_v42 = vadd.f32 %v377_v40, %v298_v22 }
 0x1cf   :  { %v698_v41 = vpop.f32.mrf.mxu0 }
 0x1d0   :  { %v731_v10 = vpop.f32.mrf.mxu1  ;;  %v455_v19 = vadd.f32 %v454_v13, %v378_v42 }
 0x1d6   :  { %v537_v23 = vpop.f32.mrf.mxu0 }
 0x1d7   :  { %v538_v43 = vadd.f32 %v537_v23, %v455_v19 }
 0x1d8   :  { %v720_v44 = vpop.f32.mrf.mxu0 }
 0x1d9   :  { %v613_v45 = vadd.f32 %v612_v18, %v538_v43 }
 0x1db   :  { %617 = vst.msk [vmem:[#allocation7] sm:$0x3] %vm616_vm3, %v613_v45 }
 0x1dc   :  { %798 = shalt.err (!%p795_p0)
}
 0x1dd   :  { %627 = dma.vmem_to_hbm [thread:$0]  %s625_s29, 32, %s973_s4, [#allocation4]  }
 0x1de   :  { %811 = dma.done.wait [#allocation4], 32  }
 0x1df   :  { %812 = vsyncadd [#allocation4], 4294967264 }
 0x1e0   :  { %631 = vsyncpa [#allocation3], 1 }
 0x1e1   :  { %632 = vsyncpa [#allocation6], 1 }
 0x1e2   :  { %633 = vsyncpa [#allocation4], 1 }

</bundles_post_ra>
